<compile_context>
chip_gen: v7x
topology: tpu7x:2x2x1
jax: 0.10.0
libtpu: 0.0.40
codegen_flags: <defaults>
</compile_context>

<pallas_src>
import functools
import math

import jax
import jax.numpy as jnp
from jax.experimental import pallas as pl
from jax.experimental.pallas import tpu as pltpu


_LANE = 128
# 2048 rows * 128 lanes * 4 B = 1 MiB per f32 tile -> <= 4 MiB of
# double-buffered VMEM (input + output), safe on v5e/v6e/v7x scoped VMEM.
_MAX_TILE_ROWS = 2048


def _round_up(x: int, m: int) -> int:
    return (x + m - 1) // m * m


def _readout_kernel(t_ref, spike_ref, out_ref):
    # spike_ref is the (tile_rows, 128) block of the t-th time slice, selected
    # by the scalar-prefetched step counter in the index_map.  Pure streaming
    # copy; the tiled grid lets Pallas double-buffer the HBM<->VMEM DMAs.
    out_ref[...] = spike_ref[...]


@functools.partial(jax.jit, static_argnames=("tile_rows", "numel", "out_shape"))
def _stateful_readout(spike_flat, t_arr, *, tile_rows, numel, out_shape):
    """spike_flat: (T, rows, 128).  Returns spike[t] reshaped to out_shape."""
    _, rows, lane = spike_flat.shape
    grid = (rows // tile_rows,)
    out_flat = pl.pallas_call(
        _readout_kernel,
        grid_spec=pltpu.PrefetchScalarGridSpec(
            num_scalar_prefetch=1,
            grid=grid,
            in_specs=[
                # data-dependent T-slice selection via the SMEM-prefetched
                # step counter; only the selected slice is DMA'd HBM->VMEM.
                pl.BlockSpec((None, tile_rows, lane),
                             lambda i, t_ref: (t_ref[0], i, 0)),
            ],
            out_specs=pl.BlockSpec((tile_rows, lane),
                                   lambda i, t_ref: (i, 0)),
        ),
        out_shape=jax.ShapeDtypeStruct((rows, lane), spike_flat.dtype),
        compiler_params=pltpu.CompilerParams(
            # independent tiles -> shardable across v7x's two TensorCores.
            dimension_semantics=("parallel",)),
    )(t_arr, spike_flat)
    # Un-pad / reshape back to the user-facing payload shape (XLA-side).
    return out_flat.reshape(-1)[:numel].reshape(out_shape)


class StatefulEncoder:
    """JAX/Pallas port of spikingjelly's StatefulEncoder base class."""

    def __init__(self, T: int):
        assert isinstance(T, int) and T >= 1
        self.T = T
        # registered memories (MemoryModule.register_memory equivalents)
        self.spike = None          # encoded spike train, shape (T, *payload)
        self.t = 0                 # current step counter (host-side int)
        self._spike_flat = None    # lane-dense padded view used by the kernel
        self._out_shape = None
        self._numel = 0
        self._tile_rows = 0

    # MemoryModule.reset()
    def reset(self):
        self.spike = None
        self._spike_flat = None
        self._out_shape = None
        self._numel = 0
        self._tile_rows = 0
        self.t = 0

    def encode(self, x):
        # encode() is abstract in the PyTorch base class; concrete subclasses
        # (e.g. PeriodicEncoder below) must define it.
        raise NotImplementedError

    def _set_spike(self, spike):
        """Store the encoded spike train (leading axis = T) in kernel layout."""
        assert spike.shape[0] == self.T
        out_shape = tuple(spike.shape[1:])
        numel = math.prod(out_shape)
        # Sublane alignment by dtype: (8,128) f32, (16,128) bf16, (32,128) i8.
        # (Narrower spike dtypes -- bf16 / int8 for binary spikes -- are
        #  supported here and roughly halve/quarter the HBM traffic.)
        itemsize = jnp.dtype(spike.dtype).itemsize
        sublane = 8 * max(1, 4 // max(1, itemsize))
        rows = _round_up(pl.cdiv(numel, _LANE), sublane)
        if rows <= _MAX_TILE_ROWS:
            tile_rows = rows                      # single tile, grid = (1,)
        else:
            tile_rows = _MAX_TILE_ROWS            # multi-tile, pipelined grid
            rows = _round_up(rows, tile_rows)
        padded = rows * _LANE

        flat = spike.reshape(self.T, numel)
        if padded != numel:
            flat = jnp.pad(flat, ((0, 0), (0, padded - numel)))

        self.spike = spike
        self._out_shape = out_shape
        self._numel = numel
        self._tile_rows = tile_rows
        self._spike_flat = flat.reshape(self.T, rows, _LANE)

    def __call__(self, x=None):
        if self.spike is None:
            self.encode(x)
        t_arr = jnp.asarray([self.t], dtype=jnp.int32)
        out = _stateful_readout(
            self._spike_flat, t_arr,
            tile_rows=self._tile_rows,
            numel=self._numel,
            out_shape=self._out_shape,
        )
        # Stateful counter update done host-side: t += 1; wrap at T.
        # No device->host sync, and the readout stays jit-friendly.
        self.t += 1
        if self.t >= self.T:
            self.t = 0
        return out


class PeriodicEncoder(StatefulEncoder):
    """Canonical concrete StatefulEncoder: x carries the T axis itself."""

    def encode(self, x):
        # x: (T, B, C, H, W)  ->  spike == x
        self._set_spike(x)


if __name__ == "__main__":
    key = jax.random.PRNGKey(0)

    # --- primary config: matches the reference module's NCHW demo ----------
    T = 4
    B, C, H, W = 2, 4, 16, 16                 # 2048 elems per step
    x = jax.random.uniform(key, (T, B, C, H, W), dtype=jnp.float32)

    enc = PeriodicEncoder(T)
    outs = []
    for step in range(2 * T):                  # exercise the wrap-around t->0
        y = enc(x if step == 0 else None)      # forward(x=None) after 1st call
        outs.append(y)
    outs = jax.block_until_ready(outs)

    for step in range(2 * T):
        ref = x[step % T]
        assert outs[step].shape == (B, C, H, W)
        assert jnp.allclose(outs[step], ref), f"mismatch at step {step}"
    assert enc.t == 0

    # --- padding path: payload not a multiple of 128 elements --------------
    T2 = 2
    shape2 = (2, 3, 5, 7)                      # 210 elems -> padded (8,128)
    x2 = jax.random.uniform(jax.random.PRNGKey(1), (T2,) + shape2,
                            dtype=jnp.float32)
    enc2 = PeriodicEncoder(T2)
    for step in range(T2):
        y2 = enc2(x2 if step == 0 else None)
        assert y2.shape == shape2
        assert jnp.allclose(y2, x2[step]), f"pad-path mismatch at step {step}"

    # --- multi-tile path: payload spans several pipelined grid tiles -------
    T3 = 2
    shape3 = (4, 16, 64, 80)                   # 327680 elems -> 2560 rows -> grid>1
    x3 = jax.random.uniform(jax.random.PRNGKey(2), (T3,) + shape3,
                            dtype=jnp.float32)
    enc3 = PeriodicEncoder(T3)
    for step in range(T3):
        y3 = enc3(x3 if step == 0 else None)
        assert jnp.allclose(y3, x3[step]), f"tile-path mismatch at step {step}"

    jax.block_until_ready((y2, y3))
    print("KERNEL_OK")
</pallas_src>

<mosaic_0001>
module attributes {stable_mosaic.version = 11 : i64} {
  func.func @_readout_kernel(%arg0: i32, %arg1: memref<1xi32, #tpu.memory_space<smem>>, %arg2: memref<1x16x128xf32, #tpu.memory_space<vmem>>, %arg3: memref<16x128xf32, #tpu.memory_space<vmem>>) attributes {dimension_semantics = [#tpu.dimension_semantics<parallel>], iteration_bounds = array<i64: 1>, scalar_prefetch = 1 : i64, scratch_operands = 0 : i64, tpu.core_type = #tpu.core_type<tc>, window_params = [{transform_indices = @transform_0, window_bounds = array<i64: 1, 16, 128>}, {transform_indices = @transform_1, window_bounds = array<i64: 16, 128>}]} {
    %c0 = arith.constant 0 : index
    %c0_0 = arith.constant 0 : index
    %c0_1 = arith.constant 0 : index
    %0 = vector.load %arg2[%c0, %c0_0, %c0_1] : memref<1x16x128xf32, #tpu.memory_space<vmem>>, vector<1x16x128xf32>
    %1 = vector.shape_cast %0 : vector<1x16x128xf32> to vector<16x128xf32>
    %c0_2 = arith.constant 0 : index
    %c0_3 = arith.constant 0 : index
    %2 = vector.load %arg3[%c0_2, %c0_3] : memref<16x128xf32, #tpu.memory_space<vmem>>, vector<16x128xf32>
    tpu.vector_store %arg3[%c0_2, %c0_3], %1 {strides = array<i32>} : memref<16x128xf32, #tpu.memory_space<vmem>>, vector<16x128xf32>,
    return
  }
  func.func @transform_0(%arg0: i32, %arg1: memref<1xi32, #tpu.memory_space<smem>>) -> (i32, i32, i32) {
    %c0 = arith.constant 0 : index
    %0 = memref.load %arg1[%c0] : memref<1xi32, #tpu.memory_space<smem>>
    %c0_i32 = arith.constant 0 : i32
    %c0_i32_0 = arith.constant 0 : i32
    return %0, %arg0, %c0_i32 : i32, i32, i32
  }
  func.func @transform_1(%arg0: i32, %arg1: memref<1xi32, #tpu.memory_space<smem>>) -> (i32, i32) {
    %c0_i32 = arith.constant 0 : i32
    %c0_i32_0 = arith.constant 0 : i32
    return %arg0, %c0_i32 : i32, i32
  }
}

</mosaic_0001>

<bundles_post_ra>
// kernel: _stateful_readout.1
= control target key start
LH: loop header
LB: loop body
LE: loop exit
PB: predicated region body
PF: predicated region fallthrough
CT: control target
= control target key end

     0   :  { %8 = vsyncpa [#allocation5], 0  ;;  %s72_s15 = smov [#allocation4]   ;;  %s108_s0 = inlined_call_operand.<no memory space> [shape: s32[1], index: 0, kind: input, shape index: {}]   ;;  %s109_s1 = inlined_call_operand.hbm [shape: f32[4,16,128], index: 1, kind: input, shape index: {}]   ;;  %s110_s2 = inlined_call_operand.vmem [shape: f32[16,128], index: 2, kind: output, shape index: {}]  }
   0x1   :  { %s42_s11 = sshll.u32 %s108_s0, 8  ;;  %s18_s16 = sshll.u32 %s72_s15, 4  ;;  %s19_s16 = int_to_ptr.vmem [resolvable:$true] %s18_s16 }
   0x2   :  { %s17_s14 = scalar_lea.hbm %s109_s1, %s42_s11  ;;  %s48_s20 = scalar_lea.hbm %s109_s1, 1024 }
   0x3   :  { %s46_s17 = scalar_lea.hbm %s17_s14, 256  ;;  %p49_p1 = scmp.lt.u32.totalorder %s17_s14, %s109_s1 }
   0x4   :  { %p47_p0 = scmp.ne.s32.totalorder %s17_s14, %s46_s17  ;;  %p50_p2 = scmp.lt.u32.totalorder %s48_s20, %s46_s17 }
   0x5   :  { %p52_p4 = scmp.lt.u32.totalorder %s46_s17, %s17_s14 }
   0x6   :  { %p51_p3 = por %p50_p2, %p49_p1 }
   0x8   :  { %p53_p5 = por %p52_p4, %p51_p3 }
   0xa   :  { %p54_p6 = pnand %p53_p5, %p47_p0 }
   0xc   :  { %57 = shalt.err (!%p54_p6)
}
   0xd   :  { %s58_s0 = scalar_lea.vmem %s19_s16, 256  ;;  %p63_p8 = scmp.lt.s32.totalorder %s19_s16, %s19_s16 }
   0xe   :  { %p59_p7 = scmp.ne.s32.totalorder %s19_s16, %s58_s0  ;;  %p64_p9 = scmp.lt.s32.totalorder %s58_s0, %s58_s0 }
  0x10   :  { %p65_p10 = por %p64_p9, %p63_p8 }
  0x12   :  { %p66_p11 = pnand %p65_p10, %p59_p7 }
  0x14   :  { %69 = shalt.err (!%p66_p11)
}
  0x15   :  { %s73_s23 = smov 128   ;;  %s74_s24 = smov 8  }
  0x16   :  { %24 = dma.hbm_to_vmem [thread:$0]  %s17_s14, 256, %s19_s16, [#allocation5], %s73_s23, %s73_s23, %s74_s24  }
  0x17   :  { %70 = dma.done.wait [#allocation5], 256  }
  0x18   :  { %71 = vsyncadd [#allocation5], 4294967040  ;;  %v29_v0 = vld [vmem:[#allocation4] sm:$0xff]  ;;  %v30_v1 = vld [vmem:[#allocation4 + $0x8] sm:$0xff] }
  0x19   :  { %31 = vst [vmem:[%s110_s2] sm:$0xff] %v29_v0  ;;  %32 = vst [vmem:[%s110_s2 + $0x8] sm:$0xff] %v30_v1 }
  0x1a   :  { %37 = vsyncpa [#allocation5], 1 }

</bundles_post_ra>
